<compile_context>
chip_gen: v7x
topology: tpu7x:2x2x1
jax: 0.10.0
libtpu: 0.0.40
codegen_flags: <defaults>
</compile_context>

<pallas_src>
import math

import jax
import jax.numpy as jnp
import numpy as np
from jax.experimental import pallas as pl
from jax.experimental.pallas import tpu as pltpu


def _contig_pool_orders(L):
    """Row orders (kernel row -> natural length position) for x_32 / x_64 / x_128 such
    that every in-kernel MaxPool becomes a max over pool_k contiguous equal slabs
    (out[r] = max_s z[s*l_out + r]) and block_4's output lands in natural order."""
    l64, l128, lout = L // 5, L // 25, L // 50
    o128 = np.array([2 * (q % lout) + q // lout for q in range(l128)], np.int32)
    o64 = np.array([5 * o128[q % l128] + q // l128 for q in range(l64)], np.int32)
    oL = np.array([5 * o64[q % l64] + q // l64 for q in range(L)], np.int32)
    return oL, o64, o128


def _am_gate(x_lc, w0, w1, w2):
    """AM gate on a channels-last (L, C) tile: sigmoid of the 3-tap zero-padded conv
    over channels of the global average (roll-based, no CxC matrix)."""
    c = x_lc.shape[1]
    g = jnp.mean(x_lc, axis=0, keepdims=True)                     # (1, C) sublane reduce
    lane = jax.lax.broadcasted_iota(jnp.int32, (1, c), 1)
    g_m1 = jnp.where(lane == 0, 0.0, pltpu.roll(g, shift=1, axis=1))        # g[j-1]
    g_p1 = jnp.where(lane == c - 1, 0.0, pltpu.roll(g, shift=c - 1, axis=1))  # g[j+1]
    a = w0 * g_m1 + w1 * g + w2 * g_p1
    # Exact sigmoid (approx reciprocal would risk the 1e-4 rtol/atol check below).
    return 1.0 / (1.0 + jnp.exp(-a))


def _am_conv_pool(x_lc, w0, w1, w2, wt, bias, pool_k):
    """One block on a (L, Cin) channels-last tile -> (L // pool_k, Cout).
    Assumes the rows of x_lc are in 'contiguous-slab pool order' (see wrapper)."""
    l_in, _ = x_lc.shape
    l_out = l_in // pool_k
    s = _am_gate(x_lc, w0, w1, w2)
    y = x_lc * (1.0 + s)                                           # atten*Y + Y
    # Pointwise Conv1d(Cin->Cout, k=1) == (L, Cin) @ (Cin, Cout) matmul + bias.
    z = jnp.dot(y, wt, preferred_element_type=jnp.float32) + bias  # (L, Cout)
    # MaxPool1d(pool_k, pool_k): rows are pre-permuted so each pool window is one row
    # of pool_k contiguous (l_out, Cout) slabs -> pool_k-1 whole-slab maxima.
    m = z[:l_out, :]
    for p in range(1, pool_k):
        m = jnp.maximum(m, z[p * l_out:(p + 1) * l_out, :])
    return m


def _make_task_kernel(bb):
    def kernel(taps_ref, x32_ref, r64_ref, r128_ref,
               w2_ref, b2_ref, w3_ref, b3_ref, w4_ref, b4_ref, out_ref):
        w2, b2 = w2_ref[...], b2_ref[...]
        w3, b3 = w3_ref[...], b3_ref[...]
        w4, b4 = w4_ref[...], b4_ref[...]
        # Static unroll over the per-step batch tile; every op stays 2D (avoids
        # reshape relayouts since L=100 rows are not 8-sublane aligned).
        for b in range(bb):
            # block_2: (L, 32) -> (L/5, 64), then residual
            h = _am_conv_pool(x32_ref[b], taps_ref[0], taps_ref[1], taps_ref[2],
                              w2, b2, 5)
            h = h + r64_ref[b]
            # block_3: (L/5, 64) -> (L/25, 128), then residual
            h = _am_conv_pool(h, taps_ref[3], taps_ref[4], taps_ref[5], w3, b3, 5)
            h = h + r128_ref[b]
            # block_4: (L/25, 128) -> (L/50, 256)
            h = _am_conv_pool(h, taps_ref[6], taps_ref[7], taps_ref[8], w4, b4, 2)
            out_ref[b] = h                                         # lane-dense (*, 256)
    return kernel


def task_forward(x_16, x_32, x_64, x_128, params):
    """Pallas implementation of Task.forward (x_16 / block_1 are dead code)."""
    del x_16
    B, c32, L = x_32.shape
    assert c32 == 32 and L % 50 == 0
    l64, l128, l_out = L // 5, L // 25, L // 50

    # NCL -> channels-last + length-axis pooling permutation (tiny constant gathers,
    # fused with the transposes under jit).
    # TODO(synk): fold these boundary transposes into the kernel if the extra XLA ops
    # ever show up in the trace (in-kernel transposes of these odd shapes are riskier).
    oL, o64, o128 = _contig_pool_orders(L)
    x32_blc = jnp.transpose(x_32, (0, 2, 1))[:, oL, :]      # (B, L, 32)
    r64_blc = jnp.transpose(x_64, (0, 2, 1))[:, o64, :]     # (B, L/5, 64)
    r128_blc = jnp.transpose(x_128, (0, 2, 1))[:, o128, :]  # (B, L/25, 128)

    taps = jnp.concatenate(
        [params["watt2"], params["watt3"], params["watt4"]]).astype(jnp.float32)  # (9,)
    w2t = params["W2"].T
    w3t = params["W3"].T
    w4t = params["W4"].T
    b2 = params["b2"].reshape(1, -1)
    b3 = params["b3"].reshape(1, -1)
    b4 = params["b4"].reshape(1, -1)

    # Batch elements per grid step: amortize per-step overhead, but keep >=2 steps so
    # both v7x TensorCores get work; cap the static unroll.
    bb = min(max(B // 2, 1), 8)
    while B % bb:
        bb -= 1

    out_blc = pl.pallas_call(
        _make_task_kernel(bb),
        out_shape=jax.ShapeDtypeStruct((B, l_out, 256), jnp.float32),
        grid=(B // bb,),
        in_specs=[
            pl.BlockSpec(memory_space=pltpu.MemorySpace.SMEM),     # 3x3 conv taps
            pl.BlockSpec((bb, L, 32), lambda i: (i, 0, 0)),        # x_32 tile
            pl.BlockSpec((bb, l64, 64), lambda i: (i, 0, 0)),      # residual x_64
            pl.BlockSpec((bb, l128, 128), lambda i: (i, 0, 0)),    # residual x_128
            pl.BlockSpec((32, 64), lambda i: (0, 0)),              # W2^T
            pl.BlockSpec((1, 64), lambda i: (0, 0)),               # b2
            pl.BlockSpec((64, 128), lambda i: (0, 0)),             # W3^T
            pl.BlockSpec((1, 128), lambda i: (0, 0)),              # b3
            pl.BlockSpec((128, 256), lambda i: (0, 0)),            # W4^T
            pl.BlockSpec((1, 256), lambda i: (0, 0)),              # b4
        ],
        out_specs=pl.BlockSpec((bb, l_out, 256), lambda i: (i, 0, 0)),
        compiler_params=pltpu.CompilerParams(
            dimension_semantics=("parallel",)),    # batch tiles across TCs on v7x
    )(taps, x32_blc, r64_blc, r128_blc, w2t, b2, w3t, b3, w4t, b4)

    return jnp.transpose(out_blc, (0, 2, 1))       # NCL (B, 256, L/50), PyTorch layout


# ------------------------- pure-JAX reference (NCL layout) ------------------------- #
def ref_block(x_ncl, w_att, w, bias, pool_k, res_ncl=None):
    g = jnp.mean(x_ncl, axis=-1)                                    # (B, C)
    gp = jnp.pad(g, ((0, 0), (1, 1)))
    a = w_att[0] * gp[:, :-2] + w_att[1] * gp[:, 1:-1] + w_att[2] * gp[:, 2:]
    s = jax.nn.sigmoid(a)[:, :, None]                               # (B, C, 1)
    y = x_ncl * (1.0 + s)
    z = jnp.einsum("oc,bcl->bol", w, y) + bias[None, :, None]
    b_, co, l = z.shape
    m = jnp.max(z.reshape(b_, co, l // pool_k, pool_k), axis=-1)
    if res_ncl is not None:
        m = m + res_ncl
    return m


def init_block_params(key, c_in, c_out):
    k1, k2, k3 = jax.random.split(key, 3)
    w_att = 0.5 * jax.random.normal(k1, (3,), jnp.float32)
    w = jax.random.normal(k2, (c_out, c_in), jnp.float32) / math.sqrt(c_in)
    b = 0.1 * jax.random.normal(k3, (c_out,), jnp.float32)
    return w_att, w, b


if __name__ == "__main__":
    key = jax.random.PRNGKey(0)
    ks = jax.random.split(key, 8)

    B = 2
    L = 100   # -> 20 after block_2 pool, -> 4 after block_3, -> 2 after block_4

    # Inputs in PyTorch NCL layout (x_16 is unused by Task.forward, kept for parity)
    x_16 = jax.random.normal(ks[0], (B, 16, L), jnp.float32)
    x_32 = jax.random.normal(ks[1], (B, 32, L), jnp.float32)
    x_64 = jax.random.normal(ks[2], (B, 64, L // 5), jnp.float32)
    x_128 = jax.random.normal(ks[3], (B, 128, L // 25), jnp.float32)

    watt2, W2, b2 = init_block_params(ks[4], 32, 64)
    watt3, W3, b3 = init_block_params(ks[5], 64, 128)
    watt4, W4, b4 = init_block_params(ks[6], 128, 256)

    params = dict(watt2=watt2, W2=W2, b2=b2,
                  watt3=watt3, W3=W3, b3=b3,
                  watt4=watt4, W4=W4, b4=b4)

    out_ncl = jax.jit(task_forward)(x_16, x_32, x_64, x_128, params)
    out_ncl = jax.block_until_ready(out_ncl)       # (B, 256, 2)

    # Correctness check against the pure-JAX reference
    r64 = ref_block(x_32, watt2, W2, b2, 5, x_64)
    r128 = ref_block(r64, watt3, W3, b3, 5, x_128)
    r256 = ref_block(r128, watt4, W4, b4, 2, None)

    np.testing.assert_allclose(np.asarray(out_ncl), np.asarray(r256), rtol=1e-4, atol=1e-4)
    print("KERNEL_OK")
</pallas_src>

<mosaic_0001>
module attributes {stable_mosaic.version = 11 : i64} {
  func.func @kernel(%arg0: i32, %arg1: memref<9xf32, #tpu.memory_space<smem>>, %arg2: memref<1x100x32xf32, #tpu.memory_space<vmem>>, %arg3: memref<1x20x64xf32, #tpu.memory_space<vmem>>, %arg4: memref<1x4x128xf32, #tpu.memory_space<vmem>>, %arg5: memref<32x64xf32, #tpu.memory_space<vmem>>, %arg6: memref<1x64xf32, #tpu.memory_space<vmem>>, %arg7: memref<64x128xf32, #tpu.memory_space<vmem>>, %arg8: memref<1x128xf32, #tpu.memory_space<vmem>>, %arg9: memref<128x256xf32, #tpu.memory_space<vmem>>, %arg10: memref<1x256xf32, #tpu.memory_space<vmem>>, %arg11: memref<1x2x256xf32, #tpu.memory_space<vmem>>) attributes {dimension_semantics = [#tpu.dimension_semantics<parallel>], iteration_bounds = array<i64: 2>, scalar_prefetch = 0 : i64, scratch_operands = 0 : i64, tpu.core_type = #tpu.core_type<tc>, window_params = [{transform_indices = @transform_0, window_bounds = array<i64: 9>}, {transform_indices = @transform_1, window_bounds = array<i64: 1, 100, 32>}, {transform_indices = @transform_2, window_bounds = array<i64: 1, 20, 64>}, {transform_indices = @transform_3, window_bounds = array<i64: 1, 4, 128>}, {pipeline_mode = #tpu.pipeline_mode<synchronous>, transform_indices = @transform_4, window_bounds = array<i64: 32, 64>}, {pipeline_mode = #tpu.pipeline_mode<synchronous>, transform_indices = @transform_5, window_bounds = array<i64: 1, 64>}, {pipeline_mode = #tpu.pipeline_mode<synchronous>, transform_indices = @transform_6, window_bounds = array<i64: 64, 128>}, {pipeline_mode = #tpu.pipeline_mode<synchronous>, transform_indices = @transform_7, window_bounds = array<i64: 1, 128>}, {pipeline_mode = #tpu.pipeline_mode<synchronous>, transform_indices = @transform_8, window_bounds = array<i64: 128, 256>}, {pipeline_mode = #tpu.pipeline_mode<synchronous>, transform_indices = @transform_9, window_bounds = array<i64: 1, 256>}, {transform_indices = @transform_10, window_bounds = array<i64: 1, 2, 256>}]} {
    %c0 = arith.constant 0 : index
    %c0_0 = arith.constant 0 : index
    %0 = vector.load %arg5[%c0, %c0_0] : memref<32x64xf32, #tpu.memory_space<vmem>>, vector<32x64xf32>
    %c0_1 = arith.constant 0 : index
    %c0_2 = arith.constant 0 : index
    %1 = vector.load %arg6[%c0_1, %c0_2] : memref<1x64xf32, #tpu.memory_space<vmem>>, vector<1x64xf32>
    %c0_3 = arith.constant 0 : index
    %c0_4 = arith.constant 0 : index
    %2 = vector.load %arg7[%c0_3, %c0_4] : memref<64x128xf32, #tpu.memory_space<vmem>>, vector<64x128xf32>
    %c0_5 = arith.constant 0 : index
    %c0_6 = arith.constant 0 : index
    %3 = vector.load %arg8[%c0_5, %c0_6] : memref<1x128xf32, #tpu.memory_space<vmem>>, vector<1x128xf32>
    %c0_7 = arith.constant 0 : index
    %c0_8 = arith.constant 0 : index
    %4 = vector.load %arg9[%c0_7, %c0_8] : memref<128x256xf32, #tpu.memory_space<vmem>>, vector<128x256xf32>
    %c0_9 = arith.constant 0 : index
    %c0_10 = arith.constant 0 : index
    %5 = vector.load %arg10[%c0_9, %c0_10] : memref<1x256xf32, #tpu.memory_space<vmem>>, vector<1x256xf32>
    %c0_11 = arith.constant 0 : index
    %c0_12 = arith.constant 0 : index
    %c0_13 = arith.constant 0 : index
    %6 = vector.load %arg2[%c0_11, %c0_12, %c0_13] : memref<1x100x32xf32, #tpu.memory_space<vmem>>, vector<1x100x32xf32>
    %7 = vector.shape_cast %6 : vector<1x100x32xf32> to vector<100x32xf32>
    %c0_14 = arith.constant 0 : index
    %8 = memref.load %arg1[%c0_14] : memref<9xf32, #tpu.memory_space<smem>>
    %c1 = arith.constant 1 : index
    %9 = memref.load %arg1[%c1] : memref<9xf32, #tpu.memory_space<smem>>
    %c2 = arith.constant 2 : index
    %10 = memref.load %arg1[%c2] : memref<9xf32, #tpu.memory_space<smem>>
    %cst = arith.constant dense<0.000000e+00> : vector<32xf32>
    %11 = vector.multi_reduction <add>, %7, %cst [0] : vector<100x32xf32> to vector<32xf32>
    %12 = vector.shape_cast %11 : vector<32xf32> to vector<1x32xf32>
    %cst_15 = arith.constant 1.000000e+02 : f32
    %13 = vector.broadcast %cst_15 : f32 to vector<1x32xf32>
    %14 = arith.divf %12, %13 : vector<1x32xf32>
    %15 = tpu.iota {dimensions = array<i32: 1>} : vector<1x32xi32>
    %c0_i32 = arith.constant 0 : i32
    %16 = vector.broadcast %c0_i32 : i32 to vector<1x32xi32>
    %17 = arith.cmpi eq, %15, %16 : vector<1x32xi32>
    %c1_i32 = arith.constant 1 : i32
    %18 = tpu.dynamic_rotate %14 by %c1_i32 dim 1 : vector<1x32xf32>, i32 -> vector<1x32xf32>
    %cst_16 = arith.constant 0.000000e+00 : f32
    %19 = vector.broadcast %cst_16 : f32 to vector<1x32xf32>
    %20 = arith.select %17, %19, %18 : vector<1x32xi1>, vector<1x32xf32>
    %c31_i32 = arith.constant 31 : i32
    %21 = vector.broadcast %c31_i32 : i32 to vector<1x32xi32>
    %22 = arith.cmpi eq, %15, %21 : vector<1x32xi32>
    %c31_i32_17 = arith.constant 31 : i32
    %23 = tpu.dynamic_rotate %14 by %c31_i32_17 dim 1 : vector<1x32xf32>, i32 -> vector<1x32xf32>
    %cst_18 = arith.constant 0.000000e+00 : f32
    %24 = vector.broadcast %cst_18 : f32 to vector<1x32xf32>
    %25 = arith.select %22, %24, %23 : vector<1x32xi1>, vector<1x32xf32>
    %26 = vector.broadcast %8 : f32 to vector<1x32xf32>
    %27 = arith.mulf %26, %20 : vector<1x32xf32>
    %28 = vector.broadcast %9 : f32 to vector<1x32xf32>
    %29 = arith.mulf %28, %14 : vector<1x32xf32>
    %30 = arith.addf %27, %29 : vector<1x32xf32>
    %31 = vector.broadcast %10 : f32 to vector<1x32xf32>
    %32 = arith.mulf %31, %25 : vector<1x32xf32>
    %33 = arith.addf %30, %32 : vector<1x32xf32>
    %cst_19 = arith.constant 0.000000e+00 : f32
    %34 = vector.broadcast %cst_19 : f32 to vector<1x32xf32>
    %35 = arith.subf %34, %33 : vector<1x32xf32>
    %36 = math.exp %35 : vector<1x32xf32>
    %cst_20 = arith.constant 1.000000e+00 : f32
    %37 = vector.broadcast %cst_20 : f32 to vector<1x32xf32>
    %38 = arith.addf %37, %36 : vector<1x32xf32>
    %cst_21 = arith.constant 1.000000e+00 : f32
    %39 = vector.broadcast %cst_21 : f32 to vector<1x32xf32>
    %40 = arith.divf %39, %38 : vector<1x32xf32>
    %cst_22 = arith.constant 1.000000e+00 : f32
    %41 = vector.broadcast %cst_22 : f32 to vector<1x32xf32>
    %42 = arith.addf %41, %40 : vector<1x32xf32>
    %43 = vector.broadcast %42 : vector<1x32xf32> to vector<100x32xf32>
    %44 = arith.mulf %7, %43 : vector<100x32xf32>
    %cst_23 = arith.constant dense<0.000000e+00> : vector<100x64xf32>
    %45 = tpu.matmul %44, %0, %cst_23 {dimension_numbers = #tpu.dot_dimension_numbers<[1], [0], [0], [1], [0, 0, 1, 1], [], []>} : vector<100x32xf32>, vector<32x64xf32>, vector<100x64xf32> -> vector<100x64xf32>
    %46 = vector.broadcast %1 : vector<1x64xf32> to vector<100x64xf32>
    %47 = arith.addf %45, %46 : vector<100x64xf32>
    %48 = vector.extract_strided_slice %47 {offsets = [0, 0], sizes = [20, 64], strides = [1, 1]} : vector<100x64xf32> to vector<20x64xf32>
    %49 = vector.extract_strided_slice %47 {offsets = [20, 0], sizes = [20, 64], strides = [1, 1]} : vector<100x64xf32> to vector<20x64xf32>
    %50 = arith.maximumf %48, %49 : vector<20x64xf32>
    %51 = vector.extract_strided_slice %47 {offsets = [40, 0], sizes = [20, 64], strides = [1, 1]} : vector<100x64xf32> to vector<20x64xf32>
    %52 = arith.maximumf %50, %51 : vector<20x64xf32>
    %53 = vector.extract_strided_slice %47 {offsets = [60, 0], sizes = [20, 64], strides = [1, 1]} : vector<100x64xf32> to vector<20x64xf32>
    %54 = arith.maximumf %52, %53 : vector<20x64xf32>
    %55 = vector.extract_strided_slice %47 {offsets = [80, 0], sizes = [20, 64], strides = [1, 1]} : vector<100x64xf32> to vector<20x64xf32>
    %56 = arith.maximumf %54, %55 : vector<20x64xf32>
    %c0_24 = arith.constant 0 : index
    %c0_25 = arith.constant 0 : index
    %c0_26 = arith.constant 0 : index
    %57 = vector.load %arg3[%c0_24, %c0_25, %c0_26] : memref<1x20x64xf32, #tpu.memory_space<vmem>>, vector<1x20x64xf32>
    %58 = vector.shape_cast %57 : vector<1x20x64xf32> to vector<20x64xf32>
    %59 = arith.addf %56, %58 : vector<20x64xf32>
    %c3 = arith.constant 3 : index
    %60 = memref.load %arg1[%c3] : memref<9xf32, #tpu.memory_space<smem>>
    %c4 = arith.constant 4 : index
    %61 = memref.load %arg1[%c4] : memref<9xf32, #tpu.memory_space<smem>>
    %c5 = arith.constant 5 : index
    %62 = memref.load %arg1[%c5] : memref<9xf32, #tpu.memory_space<smem>>
    %cst_27 = arith.constant dense<0.000000e+00> : vector<64xf32>
    %63 = vector.multi_reduction <add>, %59, %cst_27 [0] : vector<20x64xf32> to vector<64xf32>
    %64 = vector.shape_cast %63 : vector<64xf32> to vector<1x64xf32>
    %cst_28 = arith.constant 2.000000e+01 : f32
    %65 = vector.broadcast %cst_28 : f32 to vector<1x64xf32>
    %66 = arith.divf %64, %65 : vector<1x64xf32>
    %67 = tpu.iota {dimensions = array<i32: 1>} : vector<1x64xi32>
    %c0_i32_29 = arith.constant 0 : i32
    %68 = vector.broadcast %c0_i32_29 : i32 to vector<1x64xi32>
    %69 = arith.cmpi eq, %67, %68 : vector<1x64xi32>
    %c1_i32_30 = arith.constant 1 : i32
    %70 = tpu.dynamic_rotate %66 by %c1_i32_30 dim 1 : vector<1x64xf32>, i32 -> vector<1x64xf32>
    %cst_31 = arith.constant 0.000000e+00 : f32
    %71 = vector.broadcast %cst_31 : f32 to vector<1x64xf32>
    %72 = arith.select %69, %71, %70 : vector<1x64xi1>, vector<1x64xf32>
    %c63_i32 = arith.constant 63 : i32
    %73 = vector.broadcast %c63_i32 : i32 to vector<1x64xi32>
    %74 = arith.cmpi eq, %67, %73 : vector<1x64xi32>
    %c63_i32_32 = arith.constant 63 : i32
    %75 = tpu.dynamic_rotate %66 by %c63_i32_32 dim 1 : vector<1x64xf32>, i32 -> vector<1x64xf32>
    %cst_33 = arith.constant 0.000000e+00 : f32
    %76 = vector.broadcast %cst_33 : f32 to vector<1x64xf32>
    %77 = arith.select %74, %76, %75 : vector<1x64xi1>, vector<1x64xf32>
    %78 = vector.broadcast %60 : f32 to vector<1x64xf32>
    %79 = arith.mulf %78, %72 : vector<1x64xf32>
    %80 = vector.broadcast %61 : f32 to vector<1x64xf32>
    %81 = arith.mulf %80, %66 : vector<1x64xf32>
    %82 = arith.addf %79, %81 : vector<1x64xf32>
    %83 = vector.broadcast %62 : f32 to vector<1x64xf32>
    %84 = arith.mulf %83, %77 : vector<1x64xf32>
    %85 = arith.addf %82, %84 : vector<1x64xf32>
    %cst_34 = arith.constant 0.000000e+00 : f32
    %86 = vector.broadcast %cst_34 : f32 to vector<1x64xf32>
    %87 = arith.subf %86, %85 : vector<1x64xf32>
    %88 = math.exp %87 : vector<1x64xf32>
    %cst_35 = arith.constant 1.000000e+00 : f32
    %89 = vector.broadcast %cst_35 : f32 to vector<1x64xf32>
    %90 = arith.addf %89, %88 : vector<1x64xf32>
    %cst_36 = arith.constant 1.000000e+00 : f32
    %91 = vector.broadcast %cst_36 : f32 to vector<1x64xf32>
    %92 = arith.divf %91, %90 : vector<1x64xf32>
    %cst_37 = arith.constant 1.000000e+00 : f32
    %93 = vector.broadcast %cst_37 : f32 to vector<1x64xf32>
    %94 = arith.addf %93, %92 : vector<1x64xf32>
    %95 = vector.broadcast %94 : vector<1x64xf32> to vector<20x64xf32>
    %96 = arith.mulf %59, %95 : vector<20x64xf32>
    %cst_38 = arith.constant dense<0.000000e+00> : vector<20x128xf32>
    %97 = tpu.matmul %96, %2, %cst_38 {dimension_numbers = #tpu.dot_dimension_numbers<[1], [0], [0], [1], [0, 0, 1, 1], [], []>} : vector<20x64xf32>, vector<64x128xf32>, vector<20x128xf32> -> vector<20x128xf32>
    %98 = vector.broadcast %3 : vector<1x128xf32> to vector<20x128xf32>
    %99 = arith.addf %97, %98 : vector<20x128xf32>
    %100 = vector.extract_strided_slice %99 {offsets = [0, 0], sizes = [4, 128], strides = [1, 1]} : vector<20x128xf32> to vector<4x128xf32>
    %101 = vector.extract_strided_slice %99 {offsets = [4, 0], sizes = [4, 128], strides = [1, 1]} : vector<20x128xf32> to vector<4x128xf32>
    %102 = arith.maximumf %100, %101 : vector<4x128xf32>
    %103 = vector.extract_strided_slice %99 {offsets = [8, 0], sizes = [4, 128], strides = [1, 1]} : vector<20x128xf32> to vector<4x128xf32>
    %104 = arith.maximumf %102, %103 : vector<4x128xf32>
    %105 = vector.extract_strided_slice %99 {offsets = [12, 0], sizes = [4, 128], strides = [1, 1]} : vector<20x128xf32> to vector<4x128xf32>
    %106 = arith.maximumf %104, %105 : vector<4x128xf32>
    %107 = vector.extract_strided_slice %99 {offsets = [16, 0], sizes = [4, 128], strides = [1, 1]} : vector<20x128xf32> to vector<4x128xf32>
    %108 = arith.maximumf %106, %107 : vector<4x128xf32>
    %c0_39 = arith.constant 0 : index
    %c0_40 = arith.constant 0 : index
    %c0_41 = arith.constant 0 : index
    %109 = vector.load %arg4[%c0_39, %c0_40, %c0_41] : memref<1x4x128xf32, #tpu.memory_space<vmem>>, vector<1x4x128xf32>
    %110 = vector.shape_cast %109 : vector<1x4x128xf32> to vector<4x128xf32>
    %111 = arith.addf %108, %110 : vector<4x128xf32>
    %c6 = arith.constant 6 : index
    %112 = memref.load %arg1[%c6] : memref<9xf32, #tpu.memory_space<smem>>
    %c7 = arith.constant 7 : index
    %113 = memref.load %arg1[%c7] : memref<9xf32, #tpu.memory_space<smem>>
    %c8 = arith.constant 8 : index
    %114 = memref.load %arg1[%c8] : memref<9xf32, #tpu.memory_space<smem>>
    %cst_42 = arith.constant dense<0.000000e+00> : vector<128xf32>
    %115 = vector.multi_reduction <add>, %111, %cst_42 [0] : vector<4x128xf32> to vector<128xf32>
    %116 = vector.shape_cast %115 : vector<128xf32> to vector<1x128xf32>
    %cst_43 = arith.constant 4.000000e+00 : f32
    %117 = vector.broadcast %cst_43 : f32 to vector<1x128xf32>
    %118 = arith.divf %116, %117 : vector<1x128xf32>
    %119 = tpu.iota {dimensions = array<i32: 1>} : vector<1x128xi32>
    %c0_i32_44 = arith.constant 0 : i32
    %120 = vector.broadcast %c0_i32_44 : i32 to vector<1x128xi32>
    %121 = arith.cmpi eq, %119, %120 : vector<1x128xi32>
    %c1_i32_45 = arith.constant 1 : i32
    %122 = tpu.dynamic_rotate %118 by %c1_i32_45 dim 1 : vector<1x128xf32>, i32 -> vector<1x128xf32>
    %cst_46 = arith.constant 0.000000e+00 : f32
    %123 = vector.broadcast %cst_46 : f32 to vector<1x128xf32>
    %124 = arith.select %121, %123, %122 : vector<1x128xi1>, vector<1x128xf32>
    %c127_i32 = arith.constant 127 : i32
    %125 = vector.broadcast %c127_i32 : i32 to vector<1x128xi32>
    %126 = arith.cmpi eq, %119, %125 : vector<1x128xi32>
    %c127_i32_47 = arith.constant 127 : i32
    %127 = tpu.dynamic_rotate %118 by %c127_i32_47 dim 1 : vector<1x128xf32>, i32 -> vector<1x128xf32>
    %cst_48 = arith.constant 0.000000e+00 : f32
    %128 = vector.broadcast %cst_48 : f32 to vector<1x128xf32>
    %129 = arith.select %126, %128, %127 : vector<1x128xi1>, vector<1x128xf32>
    %130 = vector.broadcast %112 : f32 to vector<1x128xf32>
    %131 = arith.mulf %130, %124 : vector<1x128xf32>
    %132 = vector.broadcast %113 : f32 to vector<1x128xf32>
    %133 = arith.mulf %132, %118 : vector<1x128xf32>
    %134 = arith.addf %131, %133 : vector<1x128xf32>
    %135 = vector.broadcast %114 : f32 to vector<1x128xf32>
    %136 = arith.mulf %135, %129 : vector<1x128xf32>
    %137 = arith.addf %134, %136 : vector<1x128xf32>
    %cst_49 = arith.constant 0.000000e+00 : f32
    %138 = vector.broadcast %cst_49 : f32 to vector<1x128xf32>
    %139 = arith.subf %138, %137 : vector<1x128xf32>
    %140 = math.exp %139 : vector<1x128xf32>
    %cst_50 = arith.constant 1.000000e+00 : f32
    %141 = vector.broadcast %cst_50 : f32 to vector<1x128xf32>
    %142 = arith.addf %141, %140 : vector<1x128xf32>
    %cst_51 = arith.constant 1.000000e+00 : f32
    %143 = vector.broadcast %cst_51 : f32 to vector<1x128xf32>
    %144 = arith.divf %143, %142 : vector<1x128xf32>
    %cst_52 = arith.constant 1.000000e+00 : f32
    %145 = vector.broadcast %cst_52 : f32 to vector<1x128xf32>
    %146 = arith.addf %145, %144 : vector<1x128xf32>
    %147 = vector.broadcast %146 : vector<1x128xf32> to vector<4x128xf32>
    %148 = arith.mulf %111, %147 : vector<4x128xf32>
    %cst_53 = arith.constant dense<0.000000e+00> : vector<4x256xf32>
    %149 = tpu.matmul %148, %4, %cst_53 {dimension_numbers = #tpu.dot_dimension_numbers<[1], [0], [0], [1], [0, 0, 1, 1], [], []>} : vector<4x128xf32>, vector<128x256xf32>, vector<4x256xf32> -> vector<4x256xf32>
    %150 = vector.broadcast %5 : vector<1x256xf32> to vector<4x256xf32>
    %151 = arith.addf %149, %150 : vector<4x256xf32>
    %152 = vector.extract_strided_slice %151 {offsets = [0, 0], sizes = [2, 256], strides = [1, 1]} : vector<4x256xf32> to vector<2x256xf32>
    %153 = vector.extract_strided_slice %151 {offsets = [2, 0], sizes = [2, 256], strides = [1, 1]} : vector<4x256xf32> to vector<2x256xf32>
    %154 = arith.maximumf %152, %153 : vector<2x256xf32>
    %c0_54 = arith.constant 0 : index
    %c0_55 = arith.constant 0 : index
    %c0_56 = arith.constant 0 : index
    %155 = vector.load %arg11[%c0_54, %c0_55, %c0_56] : memref<1x2x256xf32, #tpu.memory_space<vmem>>, vector<1x2x256xf32>
    %156 = vector.shape_cast %155 : vector<1x2x256xf32> to vector<2x256xf32>
    %157 = vector.shape_cast %154 : vector<2x256xf32> to vector<1x2x256xf32>
    tpu.vector_store %arg11[%c0_54, %c0_55, %c0_56], %157 {strides = array<i32>} : memref<1x2x256xf32, #tpu.memory_space<vmem>>, vector<1x2x256xf32>,
    return
  }
  func.func @transform_0(%arg0: i32) -> i32 {
    %c0_i32 = arith.constant 0 : i32
    %c0_i32_0 = arith.constant 0 : i32
    return %c0_i32 : i32
  }
  func.func @transform_1(%arg0: i32) -> (i32, i32, i32) {
    %c0_i32 = arith.constant 0 : i32
    %c0_i32_0 = arith.constant 0 : i32
    %c0_i32_1 = arith.constant 0 : i32
    return %arg0, %c0_i32, %c0_i32_0 : i32, i32, i32
  }
  func.func @transform_2(%arg0: i32) -> (i32, i32, i32) {
    %c0_i32 = arith.constant 0 : i32
    %c0_i32_0 = arith.constant 0 : i32
    %c0_i32_1 = arith.constant 0 : i32
    return %arg0, %c0_i32, %c0_i32_0 : i32, i32, i32
  }
  func.func @transform_3(%arg0: i32) -> (i32, i32, i32) {
    %c0_i32 = arith.constant 0 : i32
    %c0_i32_0 = arith.constant 0 : i32
    %c0_i32_1 = arith.constant 0 : i32
    return %arg0, %c0_i32, %c0_i32_0 : i32, i32, i32
  }
  func.func @transform_4(%arg0: i32) -> (i32, i32) {
    %c0_i32 = arith.constant 0 : i32
    %c0_i32_0 = arith.constant 0 : i32
    %c0_i32_1 = arith.constant 0 : i32
    return %c0_i32, %c0_i32_0 : i32, i32
  }
  func.func @transform_5(%arg0: i32) -> (i32, i32) {
    %c0_i32 = arith.constant 0 : i32
    %c0_i32_0 = arith.constant 0 : i32
    %c0_i32_1 = arith.constant 0 : i32
    return %c0_i32, %c0_i32_0 : i32, i32
  }
  func.func @transform_6(%arg0: i32) -> (i32, i32) {
    %c0_i32 = arith.constant 0 : i32
    %c0_i32_0 = arith.constant 0 : i32
    %c0_i32_1 = arith.constant 0 : i32
    return %c0_i32, %c0_i32_0 : i32, i32
  }
  func.func @transform_7(%arg0: i32) -> (i32, i32) {
    %c0_i32 = arith.constant 0 : i32
    %c0_i32_0 = arith.constant 0 : i32
    %c0_i32_1 = arith.constant 0 : i32
    return %c0_i32, %c0_i32_0 : i32, i32
  }
  func.func @transform_8(%arg0: i32) -> (i32, i32) {
    %c0_i32 = arith.constant 0 : i32
    %c0_i32_0 = arith.constant 0 : i32
    %c0_i32_1 = arith.constant 0 : i32
    return %c0_i32, %c0_i32_0 : i32, i32
  }
  func.func @transform_9(%arg0: i32) -> (i32, i32) {
    %c0_i32 = arith.constant 0 : i32
    %c0_i32_0 = arith.constant 0 : i32
    %c0_i32_1 = arith.constant 0 : i32
    return %c0_i32, %c0_i32_0 : i32, i32
  }
  func.func @transform_10(%arg0: i32) -> (i32, i32, i32) {
    %c0_i32 = arith.constant 0 : i32
    %c0_i32_0 = arith.constant 0 : i32
    %c0_i32_1 = arith.constant 0 : i32
    return %arg0, %c0_i32, %c0_i32_0 : i32, i32, i32
  }
}

</mosaic_0001>

<bundles_post_ra>
// kernel: task_forward.1
= control target key start
LH: loop header
LB: loop body
LE: loop exit
PB: predicated region body
PF: predicated region fallthrough
CT: control target
= control target key end

     0   :  { %15 = vsyncpa [#allocation4], 0  ;;  %s2062_s0 = inlined_call_operand.vmem [shape: f32[9], index: 0, kind: input, shape index: {}]   ;;  %s2063_s1 = inlined_call_operand.vmem [shape: f32[2,100,32], index: 1, kind: input, shape index: {}]   ;;  %s2064_s2 = inlined_call_operand.vmem [shape: f32[2,20,64], index: 2, kind: input, shape index: {}]   ;;  %s2065_s3 = inlined_call_operand.vmem [shape: f32[2,4,128], index: 3, kind: input, shape index: {}]   ;;  %s2066_s4 = inlined_call_operand.vmem [shape: f32[32,64], index: 4, kind: input, shape index: {}]   ;;  %s2067_s5 = inlined_call_operand.vmem [shape: f32[1,64], index: 5, kind: input, shape index: {}]   ;;  %s2068_s6 = inlined_call_operand.vmem [shape: f32[64,128], index: 6, kind: input, shape index: {}]   ;;  %s2069_s7 = inlined_call_operand.vmem [shape: f32[1,128], index: 7, kind: input, shape index: {}]   ;;  %s2070_s8 = inlined_call_operand.vmem [shape: f32[128,256], index: 8, kind: input, shape index: {}]   ;;  %s2071_s9 = inlined_call_operand.vmem [shape: f32[1,256], index: 9, kind: input, shape index: {}]   ;;  %s2072_s10 = inlined_call_operand.hbm [shape: f32[2,2,256], index: 10, kind: output, shape index: {}]  }
   0x1   :  { %16 = vsyncpa [#allocation3], 0 }
   0x2   :  { %18 = vsyncpa [#allocation3 + $0x1], 0  ;;  %s1605_s13 = smov 0   ;;  %s1607_s14 = smov 0  }
   0x3   :  { %s1609_s15 = smov 0   ;;  %s1611_s16 = smov 0  }
   0x4 LB: > { %s1626_s17 = sadd.s32 4294967295, %s1537_s16   ;;  %s1190_s18 = sadd.s32 4294967294, %s1537_s16   ;;  %s1537_s16 = sphi %s1611_s16, %s2079_s16   ;;  %s1533_s15 = sphi %s1609_s15, %s2078_s15   ;;  %s1529_s14 = sphi %s1607_s14, %s2077_s14   ;;  %s1525_s13 = sphi %s1605_s13, %s2076_s13  }
   0x5   : > { %s1630_s19 = sadd.s32 1, %s1537_s16   ;;  %s256_s20 = sadd.s32 1, %s1533_s15 }
   0x6   : > { %s253_s21 = ssub.s32 %s1537_s16, %s1630_s19  ;;  %p266_p0 = scmp.ne.s32.totalorder %s1533_s15, %s1529_s14 }
   0x7   : > { %p254_p1 = scmp.eq.s32.totalorder %s253_s21, 0  ;;  %p267_p2 = scmp.eq.s32.totalorder %s1626_s17, 1 }
   0x8   : > { %p272_p3 = scmp.ne.s32.totalorder %s1529_s14, %s1525_s13  ;;  %p273_p4 = scmp.eq.s32.totalorder %s1190_s18, 1 }
   0x9   : > { %s1641_s22 = scalar_select %p254_p1, %s1533_s15, %s256_s20  }
   0xa   : > { %p1643_p5 = por %p267_p2, %p266_p0  ;;  %p1647_p6 = por %p273_p4, %p272_p3 }
   0xb   : > { %p1191_p7 = scmp.ge.s32.totalorder %s1537_s16, 1  ;;  %p280_p8 = scmp.lt.s32.totalorder %s1537_s16, 3 }
   0xc   : > { %p1399_p9 = scmp.eq.s32.totalorder %s1626_s17, 0  ;;  %s293_s28 = sshll.u32 %s2062_s0, 4  ;;  %s294_s28 = int_to_ptr.vmem [resolvable:$true] %s293_s28 }
   0xd   : > { %p1654_p10 = pnand %p1191_p7, %p280_p8  ;;  %s1456_s29 = scalar_lea.vmem %s294_s28, 16 }
   0xe   : > { %p1457_p13 = scmp.ne.s32.totalorder %s294_s28, %s1456_s29  ;;  %p1464_p3 = scmp.lt.s32.totalorder %s294_s28, %s294_s28 }
   0xf   : > { %p1391_p11 = pneg %p1654_p10  ;;  %p1465_p4 = scmp.lt.s32.totalorder %s1456_s29, %s1456_s29 }
  0x11   : > { %p1392_p12 = pnand %p1399_p9, %p1391_p11  ;;  %p1466_p7 = por %p1465_p4, %p1464_p3 }
  0x13   : > { %p1458_p0 = pneg %p1392_p12 }
  0x15   : > { %p1459_p1 = pnand %p1458_p0, %p1457_p13 }
  0x17   : > { %p1460_p2 = pneg %p1459_p1 }
  0x19   : > { %p1467_p8 = pnand %p1466_p7, %p1460_p2 }
  0x1b   : > { %1470 = shalt.err (!%p1467_p8)
}
  0x1c   : > { %s1539_s30 = smov [#allocation2]   ;;  %347 = sbr.rel (%p1654_p10) target bundleno = 1778 (0x6f2), region = 60 }
  0x1d   : > { %1394 = dma.vmem_to_smem (!%p1392_p12), %s294_s28, 16, %s1539_s30, [#allocation4]  }
  0x23   : > { %1516 = dma.done.wait (%p1399_p9), [#allocation4], 16  }
  0x24   : > { %1518 = vsyncadd (%p1399_p9), [#allocation4], 4294967280 }
  0x25   : > { %353 = sfence }
  0x26   : > { %p395_p11 = scmp.lt.s32.totalorder %s1626_s17, 1  ;;  %vm472_vm0 = vcmask 261120   ;;  %vm496_vm1 = vcmask 257024   ;;  %s1540_s25 = smov 32   ;;  %vm510_vm2 = vcmask 1047808   ;;  %v409_v49 = vld [vmem:[%s2066_s4] sm:$0xff]  ;;  %v507_v57 = vlaneseq }
  0x27   : > { %s1541_s26 = smov 97   ;;  %s1542_s27 = smov 127   ;;  %v410_v50 = vld [vmem:[%s2066_s4 + $0x8] sm:$0xff]  ;;  %v1543_v52 = vmov 0.0|0.0   ;;  %v411_v53 = vld [vmem:[%s2066_s4 + $0x10] sm:$0xff]  ;;  %v412_v54 = vld [vmem:[%s2066_s4 + $0x18] sm:$0xff] }
  0x28   : > { %s1673_s11 = scalar_select %p395_p11, %s1626_s17, 1  ;;  %v1334_v51 = vpack.c.bf16 %v410_v50, %v409_v49  ;;  %1333 = vmatprep.subr.bf16.mxu0 %v1543_v52  ;;  %1339 = vmatprep.subr.bf16.mxu1 %v1543_v52  ;;  %v1337_v55 = vpack.c.bf16 %v412_v54, %v411_v53  ;;  %vm1544_vm3 = vmmov 0   ;;  %v1545_v56 = vmov 0.0  }
  0x29   : > { %1269 = vmatprep.mubr.msk.f32.mxu0 %vm1544_vm3, %v1545_v56  ;;  %1324 = vmatprep.mubr.msk.f32.mxu1 %vm1544_vm3, %v1545_v56  ;;  %s1200_s28 = sld [smem:[#allocation2 + $0x1]]  ;;  %v1765_v58 = vand.u32 127, %v507_v57  ;;  %s1201_s29 = sld [smem:[#allocation2 + $0x2]]  ;;  %vm737_vm6 = vcmask 1043456   ;;  %vm778_vm7 = vcmask 523264   ;;  %vm782_vm8 = vcmask 519168  }
  0x2a   : > { %s1383_s12 = smul.u32 104, %s1673_s11  ;;  %1335 = vmatpush3.bf16.msra.mxu0 %v1334_v51  ;;  %vm793_vm9 = vcmask 1048064  }
  0x2b   : > { %1336 = vmatprep.subr.bf16.mxu0 %v1543_v52  ;;  %vm509_vm4 = vcmp.eq.s32.totalorder %v1765_v58, 0  ;;  %vm522_vm5 = vcmp.eq.s32.totalorder %v1765_v58, 31  ;;  %s1384_s18 = smul.u32 24, %s1673_s11  ;;  %vm805_vm10 = vcmp.eq.s32.totalorder %v1765_v58, 63  ;;  %vm954_vm11 = vcmp.eq.s32.totalorder %v1765_v58, 127 }
  0x2c   : > { %s1679_s21 = scalar_lea.vmem %s2063_s1, %s1383_s12  ;;  %s392_s12 = sand.u32 1, %s1529_s14  }
  0x2d   : > { %v1682_v0 = vld [vmem:[%s1679_s21] sm:$0xff]  ;;  %v1685_v1 = vld [vmem:[%s1679_s21 + $0x8] sm:$0xff]  ;;  %v1688_v2 = vld [vmem:[%s1679_s21 + $0x10] sm:$0xff] }
  0x2e   : > { %v1691_v3 = vld [vmem:[%s1679_s21 + $0x18] sm:$0xff]  ;;  %v473_v4 = vsel %vm472_vm0, %v1682_v0, 0.0  ;;  %v474_v5 = vsel %vm472_vm0, %v1685_v1, 0.0  ;;  %v476_v6 = vsel %vm472_vm0, %v1688_v2, 0.0  ;;  %v1700_v7 = vld [vmem:[%s1679_s21 + $0x20] sm:$0xff]  ;;  %v1705_v10 = vld [vmem:[%s1679_s21 + $0x28] sm:$0xff]  ;;  %1338 = vmatpush3.bf16.msra.mxu0 %v1337_v55 }
  0x2f   : > { %v475_v8 = vadd.f32 %v474_v5, %v473_v4  ;;  %v478_v9 = vsel %vm472_vm0, %v1691_v3, 0.0  ;;  %v480_v12 = vsel %vm472_vm0, %v1700_v7, 0.0  ;;  %v1710_v13 = vld [vmem:[%s1679_s21 + $0x30] sm:$0xff]  ;;  %v482_v15 = vsel %vm472_vm0, %v1705_v10, 0.0  ;;  %v1715_v16 = vld [vmem:[%s1679_s21 + $0x38] sm:$0xff]  ;;  %v1720_v19 = vld [vmem:[%s1679_s21 + $0x40] sm:$0xff] }
  0x30   : > { %v484_v18 = vsel %vm472_vm0, %v1710_v13, 0.0  ;;  %v486_v21 = vsel %vm472_vm0, %v1715_v16, 0.0  ;;  %v1725_v22 = vld [vmem:[%s1679_s21 + $0x48] sm:$0xff]  ;;  %v488_v24 = vsel %vm472_vm0, %v1720_v19, 0.0  ;;  %v1730_v25 = vld [vmem:[%s1679_s21 + $0x50] sm:$0xff]  ;;  %v1735_v28 = vld [vmem:[%s1679_s21 + $0x58] sm:$0xff]  ;;  %v529_v60 = vstv %s1200_s28 }
  0x31   : > { %v477_v11 = vadd.f32 %v476_v6, %v475_v8  ;;  %v490_v27 = vsel %vm472_vm0, %v1725_v22, 0.0  ;;  %v492_v30 = vsel %vm472_vm0, %v1730_v25, 0.0  ;;  %v1740_v31 = vld [vmem:[%s1679_s21 + $0x60] sm:$0xf]  ;;  %v494_v33 = vsel %vm472_vm0, %v1735_v28, 0.0  ;;  %s1547_s28 = smov 65  }
  0x32   : > { %v497_v35 = vsel %vm496_vm1, %v1740_v31, 0.0  ;;  %v532_v5 = vstv %s1201_s29  ;;  %s1218_s29 = sld [smem:[#allocation2 + $0x5]]  ;;  %s1548_s21 = smov 1  }
  0x33   : > { %v479_v14 = vadd.f32 %v478_v9, %v477_v11 }
  0x35   : > { %v481_v17 = vadd.f32 %v480_v12, %v479_v14 }
  0x37   : > { %v483_v20 = vadd.f32 %v482_v15, %v481_v17 }
  0x39   : > { %v485_v23 = vadd.f32 %v484_v18, %v483_v20  ;;  %v1771_v20 = vshrl.u32 %v507_v57, 7 }
  0x3b   : > { %v487_v26 = vadd.f32 %v486_v21, %v485_v23  ;;  %v1774_v21 = vsub.s32 0, %v1771_v20 }
  0x3d   : > { %v489_v29 = vadd.f32 %v488_v24, %v487_v26 }
  0x3f   : > { %v491_v32 = vadd.f32 %v490_v27, %v489_v29 }
  0x41   : > { %v493_v34 = vadd.f32 %v492_v30, %v491_v32 }
  0x43   : > { %v495_v36 = vadd.f32 %v494_v33, %v493_v34 }
  0x45   : > { %v498_v37 = vadd.f32 %v497_v35, %v495_v36 }
  0x47   : > { %v499_v38 = vrot.slane %v498_v37, 4 }
  0x49   : > { %v500_v39 = vadd.f32 %v499_v38, %v498_v37  ;;  %v1202_v37 = vld [vmem:[%s2067_s5] ss:$0 sm:$0xff] }
  0x4b   : > { %v501_v40 = vrot.slane %v500_v39, 2 }
  0x4d   : > { %v502_v41 = vadd.f32 %v501_v40, %v500_v39 }
  0x4f   : > { %v503_v42 = vrot.slane %v502_v41, 1 }
  0x51   : > { %v504_v43 = vadd.f32 %v503_v42, %v502_v41 }
  0x53   : > { %v506_v44 = vmul.f32 0.01, %v504_v43 }
  0x55   : > { %511 = vrot.lane.b32.xlu0 %v506_v44, %s1540_s25  ;;  %v530_v4 = vmul.f32 %v529_v60, %v506_v44 }
  0xc7   : > { %v512_v45 = vpop.permute.xlu0 %511 }
  0xc8   : > { %v513_v46 = vsel %vm510_vm2, %v512_v45, %v506_v44 }
  0xc9   : > { %514 = vrot.lane.b32.xlu0 %v513_v46, %s1540_s25  ;;  %s404_s25 = scalar_lea.vmem %s2064_s2, %s1384_s18  ;;  %s1199_s18 = sshll.u32 %s1673_s11, 2 }
  0xca   : > { %s1223_s11 = sld [smem:[#allocation2 + $0x6]] }
 0x13b   : > { %v515_v47 = vpop.permute.xlu0 %514 }
 0x13c   : > { %v516_v48 = vsel %vm510_vm2, %v515_v47, %v506_v44 }
 0x13d   : > { %518 = vrot.lane.b32.xlu1 %v516_v48, %s1541_s26  ;;  %s469_s26 = sld [smem:[#allocation2]] }
 0x141   : > { %523 = vrot.lane.b32.xlu1 %v516_v48, %s1542_s27 }
 0x143   : > { %v527_v59 = vstv %s469_s26  ;;  %s1546_s26 = smov 64  }
 0x1af   : > { %v519_v61 = vpop.permute.xlu1 %518 }
 0x1b0   : > { %v521_v62 = vsel %vm509_vm4, 0.0, %v519_v61 }
 0x1b1   : > { %v528_v63 = vmul.f32 %v527_v59, %v521_v62 }
 0x1b3   : > { %v524_v6 = vpop.permute.xlu1 %523  ;;  %v531_v9 = vadd.f32 %v530_v4, %v528_v63 }
 0x1b4   : > { %v526_v8 = vsel %vm522_vm5, 0.0, %v524_v6 }
 0x1b5   : > { %v533_v11 = vmul.f32 %v532_v5, %v526_v8 }
 0x1b7   : > { %v534_v12 = vadd.f32 %v533_v11, %v531_v9 }
 0x1b9   : > { %v535_v14 = vsub.f32 0.0, %v534_v12 }
 0x1bb   : > { %v536_v15 = vmul.f32 1.442695, %v535_v14 }
 0x1bd   : > { %1444 = vpow2.f32 %v536_v15 }
 0x1c7   : > { %v1445_v17 = vpop.eup %1444 }
 0x1c8   : > { %v538_v18 = vadd.f32 1.0, %v1445_v17 }
 0x1ca   : > { %1446 = vrcp.f32 %v538_v18 }
 0x1d4   : > { %v1447_v23 = vpop.eup %1446 }
 0x1d5   : > { %v541_v24 = vadd.f32 1.0, %v1447_v23 }
 0x1d7   : > { %v545_v26 = vrot.slane %v541_v24, %v1774_v21 }
 0x1d9   : > { %v546_v27 = vmul.f32 %v545_v26, %v1682_v0  ;;  %v547_v29 = vmul.f32 %v545_v26, %v1685_v1  ;;  %v548_v30 = vmul.f32 %v545_v26, %v1688_v2  ;;  %v549_v0 = vmul.f32 %v545_v26, %v1691_v3 }
 0x1da   : > { %v550_v1 = vmul.f32 %v545_v26, %v1700_v7  ;;  %v551_v2 = vmul.f32 %v545_v26, %v1705_v10  ;;  %v552_v3 = vmul.f32 %v545_v26, %v1710_v13  ;;  %v553_v7 = vmul.f32 %v545_v26, %v1715_v16 }
 0x1db   : > { %1270 = vmatmul.mubr.msk.f32.vlgmr.msra.gmra.mrb[0].mxu0 %vm472_vm0, %v546_v27  ;;  %v554_v10 = vmul.f32 %v545_v26, %v1720_v19  ;;  %v555_v13 = vmul.f32 %v545_v26, %v1725_v22  ;;  %v556_v16 = vmul.f32 %v545_v26, %v1730_v25  ;;  %v557_v19 = vmul.f32 %v545_v26, %v1735_v28 }
 0x1dc   : > { %1272 = vmatprep.mubr.msk.f32.mxu0 %vm1544_vm3, %v1545_v56  ;;  %v558_v22 = vmul.f32 %v545_v26, %v1740_v31 }
 0x1df   : > { %1273 = vmatmul.mubr.msk.f32.gmra.mrb[2].mxu0 %vm472_vm0, %v547_v29 }
 0x1e0   : > { %1275 = vmatprep.mubr.msk.f32.mxu0 %vm1544_vm3, %v1545_v56 }
 0x1e3   : > { %1276 = vmatmul.mubr.msk.f32.gmra.mrb[4].mxu0 %vm472_vm0, %v548_v30 }
 0x1e4   : > { %1278 = vmatprep.mubr.msk.f32.mxu0 %vm1544_vm3, %v1545_v56 }
 0x1e7   : > { %1279 = vmatmul.mubr.msk.f32.gmra.mrb[6].mxu0 %vm472_vm0, %v549_v0 }
 0x1e8   : > { %1281 = vmatprep.mubr.msk.f32.mxu0 %vm1544_vm3, %v1545_v56 }
 0x1eb   : > { %1282 = vmatmul.mubr.msk.f32.gmra.mrb[8].mxu0 %vm472_vm0, %v550_v1 }
 0x1ec   : > { %1284 = vmatprep.mubr.msk.f32.mxu0 %vm1544_vm3, %v1545_v56 }
 0x1ef   : > { %1285 = vmatmul.mubr.msk.f32.gmra.mrb[10].mxu0 %vm472_vm0, %v551_v2 }
 0x1f0   : > { %1287 = vmatprep.mubr.msk.f32.mxu0 %vm1544_vm3, %v1545_v56 }
 0x1f3   : > { %1288 = vmatmul.mubr.msk.f32.gmra.mrb[12].mxu0 %vm472_vm0, %v552_v3 }
 0x1f4   : > { %1290 = vmatprep.mubr.msk.f32.mxu0 %vm1544_vm3, %v1545_v56 }
 0x1f7   : > { %1291 = vmatmul.mubr.msk.f32.gmra.mrb[14].mxu0 %vm472_vm0, %v553_v7 }
 0x1f8   : > { %1293 = vmatprep.mubr.msk.f32.mxu0 %vm1544_vm3, %v1545_v56 }
 0x1fb   : > { %1294 = vmatmul.mubr.msk.f32.gmra.mrb[16].mxu0 %vm472_vm0, %v554_v10 }
 0x1fc   : > { %1296 = vmatprep.mubr.msk.f32.mxu0 %vm1544_vm3, %v1545_v56 }
 0x1ff   : > { %1297 = vmatmul.mubr.msk.f32.gmra.mrb[18].mxu0 %vm472_vm0, %v555_v13 }
 0x200   : > { %1299 = vmatprep.mubr.msk.f32.mxu0 %vm1544_vm3, %v1545_v56 }
 0x203   : > { %1300 = vmatmul.mubr.msk.f32.gmra.mrb[20].mxu0 %vm472_vm0, %v556_v16 }
 0x204   : > { %1302 = vmatprep.mubr.msk.f32.mxu0 %vm1544_vm3, %v1545_v56 }
 0x207   : > { %1303 = vmatmul.mubr.msk.f32.gmra.mrb[22].mxu0 %vm472_vm0, %v557_v19  ;;  %v769_v19 = vld [vmem:[%s404_s25] sm:$0xff] }
 0x208   : > { %1305 = vmatprep.mubr.msk.f32.mxu0 %vm1544_vm3, %v1545_v56 }
 0x20b   : > { %1306 = vmatmul.mubr.msk.f32.gmra.mrb[24].mxu0 %vm472_vm0, %v558_v22  ;;  %v770_v22 = vld [vmem:[%s404_s25 + $0x8] sm:$0xff] }
 0x2ae   : > { %v670_v32 = vpop.f32.mrb[0].mxu0 }
 0x2af   : > { %v1271_v33 = vpop.f32.mrb[1].mxu0  ;;  %v671_v31 = vadd.f32 %v1202_v37, %v670_v32 }
 0x2b2   : > { %v675_v34 = vpop.f32.mrb[2].mxu0 }
 0x2b3   : > { %v1274_v25 = vpop.f32.mrb[3].mxu0  ;;  %v676_v49 = vadd.f32 %v1202_v37, %v675_v34 }
 0x2b6   : > { %v680_v35 = vpop.f32.mrb[4].mxu0 }
 0x2b7   : > { %v1277_v36 = vpop.f32.mrb[5].mxu0  ;;  %v681_v28 = vadd.f32 %v1202_v37, %v680_v35 }
 0x2b9   : > { %v738_v41 = vrot.slane %v681_v28, 4 }
 0x2ba   : > { %v685_v38 = vpop.f32.mrb[6].mxu0 }
 0x2bb   : > { %v686_v39 = vadd.f32 %v1202_v37, %v685_v38  ;;  %v1280_v40 = vpop.f32.mrb[7].mxu0 }
 0x2bd   : > { %v739_v42 = vrot.slane %v686_v39, 4 }
 0x2be   : > { %v690_v43 = vpop.f32.mrb[8].mxu0 }
 0x2bf   : > { %v691_v44 = vadd.f32 %v1202_v37, %v690_v43  ;;  %v1283_v45 = vpop.f32.mrb[9].mxu0  ;;  %v740_v46 = vsel %vm737_vm6, %v738_v41, %v739_v42 }
 0x2c0   : > { %v746_v47 = vmax.f32 %v671_v31, %v740_v46 }
 0x2c1   : > { %v741_v48 = vrot.slane %v691_v44, 4 }
 0x2c2   : > { %v695_v50 = vpop.f32.mrb[10].mxu0 }
 0x2c3   : > { %v748_v51 = vmax.f32 %v681_v28, %v741_v48  ;;  %v696_v53 = vadd.f32 %v1202_v37, %v695_v50  ;;  %v1286_v54 = vpop.f32.mrb[11].mxu0  ;;  %v742_v55 = vsel %vm737_vm6, %v739_v42, %v741_v48  ;;  %v771_v28 = vld [vmem:[%s404_s25 + $0x10] sm:$0xf]  ;;  %s408_s25 = scalar_lea.vmem %s2065_s3, %s1199_s18  ;;  %s1196_s18 = sshll.u32 %s392_s12, 2 }
 0x2c4   : > { %v747_v57 = vmax.f32 %v676_v49, %v742_v55  ;;  %v414_v55 = vld [vmem:[%s2068_s6] sm:$0xff]  ;;  %s394_s20 = scalar_lea.vmem [#allocation5], %s1196_s18 }
 0x2c5   : > { %v749_v59 = vmax.f32 %v746_v47, %v696_v53 }
 0x2c6   : > { %v700_v60 = vpop.f32.mrb[12].mxu0 }
 0x2c7   : > { %v701_v61 = vadd.f32 %v1202_v37, %v700_v60  ;;  %v1289_v62 = vpop.f32.mrb[13].mxu0  ;;  %v416_v60 = vld [vmem:[%s2068_s6 + $0x10] sm:$0xff] }
 0x2c9   : > { %v750_v63 = vmax.f32 %v747_v57, %v701_v61  ;;  %v415_v57 = vld [vmem:[%s2068_s6 + $0x8] sm:$0xff]  ;;  %v417_v61 = vld [vmem:[%s2068_s6 + $0x18] sm:$0xff] }
 0x2ca   : > { %v705_v4 = vpop.f32.mrb[14].mxu0  ;;  %v1343_v62 = vpack.c.bf16 %v417_v61, %v416_v60 }
 0x2cb   : > { %v706_v5 = vadd.f32 %v1202_v37, %v705_v4  ;;  %v1292_v6 = vpop.f32.mrb[15].mxu0  ;;  %v419_v4 = vld [vmem:[%s2068_s6 + $0x28] sm:$0xff] }
 0x2cc   : > { %v420_v6 = vld [vmem:[%s2068_s6 + $0x30] sm:$0xff] }
 0x2cd   : > { %v751_v8 = vmax.f32 %v748_v51, %v706_v5  ;;  %v755_v14 = vrot.slane %v706_v5, 4 }
 0x2ce   : > { %v710_v9 = vpop.f32.mrb[16].mxu0 }
 0x2cf   : > { %v711_v11 = vadd.f32 %v1202_v37, %v710_v9  ;;  %v1295_v12 = vpop.f32.mrb[17].mxu0 }
 0x2d1   : > { %v756_v15 = vrot.slane %v711_v11, 4 }
 0x2d2   : > { %v715_v17 = vpop.f32.mrb[18].mxu0 }
 0x2d3   : > { %v716_v18 = vadd.f32 %v1202_v37, %v715_v17  ;;  %v1298_v23 = vpop.f32.mrb[19].mxu0  ;;  %v757_v24 = vsel %vm737_vm6, %v755_v14, %v756_v15  ;;  %v815_v17 = vstv %s1218_s29 }
 0x2d4   : > { %v763_v26 = vmax.f32 %v749_v59, %v757_v24  ;;  %v1340_v59 = vpack.c.bf16 %v415_v57, %v414_v55  ;;  %v423_v57 = vld [vmem:[%s2070_s8] sm:$0xff] }
 0x2d5   : > { %v758_v27 = vrot.slane %v716_v18, 4 }
 0x2d6   : > { %v720_v29 = vpop.f32.mrb[20].mxu0  ;;  %1341 = vmatpush3.bf16.msra.mxu1 %v1340_v59  ;;  %v425_v59 = vld [vmem:[%s2070_s8 + $0x10] sm:$0xff] }
 0x2d7   : > { %v765_v30 = vmax.f32 %v751_v8, %v758_v27  ;;  %v721_v0 = vadd.f32 %v1202_v37, %v720_v29  ;;  %v1301_v1 = vpop.f32.mrb[21].mxu0  ;;  %v759_v2 = vsel %vm737_vm6, %v756_v15, %v758_v27  ;;  %1342 = vmatprep.subr.bf16.mxu1 %v1543_v52  ;;  %v421_v8 = vld [vmem:[%s2068_s6 + $0x38] sm:$0xff]  ;;  %v1353_v61 = vpack.c.bf16 %v425_v59, %v423_v57 }
 0x2d8   : > { %v764_v3 = vmax.f32 %v750_v63, %v759_v2  ;;  %v418_v63 = vld [vmem:[%s2068_s6 + $0x20] sm:$0xff]  ;;  %v1349_v9 = vpack.c.bf16 %v421_v8, %v420_v6  ;;  %v429_v6 = vld [vmem:[%s2070_s8 + $0x30] sm:$0xff] }
 0x2d9   : > { %v766_v7 = vmax.f32 %v763_v26, %v721_v0  ;;  %v1346_v5 = vpack.c.bf16 %v419_v4, %v418_v63  ;;  %v430_v63 = vld [vmem:[%s2070_s8 + $0x38] sm:$0xff] }
 0x2da   : > { %v725_v10 = vpop.f32.mrb[22].mxu0  ;;  %1344 = vmatpush3.bf16.msra.mxu1 %v1343_v62  ;;  %v428_v62 = vld [vmem:[%s2070_s8 + $0x28] sm:$0xff] }
 0x2db   : > { %v726_v13 = vadd.f32 %v1202_v37, %v725_v10  ;;  %v1304_v16 = vpop.f32.mrb[23].mxu0  ;;  %v1838_v34 = vadd.f32 %v769_v19, %v766_v7  ;;  %1345 = vmatprep.subr.bf16.mxu1 %v1543_v52  ;;  %v1355_v4 = vpack.c.bf16 %v430_v63, %v428_v62 }
 0x2dd   : > { %v767_v32 = vmax.f32 %v764_v3, %v726_v13  ;;  %v779_v40 = vsel %vm778_vm7, %v1838_v34, 0.0 }
 0x2de   : > { %v730_v33 = vpop.f32.mrb[24].mxu0  ;;  %1347 = vmatpush3.bf16.msra.mxu1 %v1346_v5  ;;  %v427_v5 = vld [vmem:[%s2070_s8 + $0x20] sm:$0xff] }
 0x2df   : > { %v1840_v25 = vadd.f32 %v770_v22, %v767_v32  ;;  %v731_v35 = vadd.f32 %v1202_v37, %v730_v33  ;;  %v1307_v36 = vpop.f32.mrb[25].mxu0  ;;  %1348 = vmatprep.subr.bf16.mxu1 %v1543_v52  ;;  %v1219_v22 = vld [vmem:[%s2069_s7] ss:$0 sm:$0xff]  ;;  %v1357_v8 = vpack.c.bf16 %v429_v6, %v427_v5 }
 0x2e1   : > { %v780_v38 = vsel %vm778_vm7, %v1840_v25, 0.0  ;;  %v768_v39 = vmax.f32 %v765_v30, %v731_v35 }
 0x2e2   : > { %v781_v42 = vadd.f32 %v780_v38, %v779_v40  ;;  %1350 = vmatpush3.bf16.msra.mxu1 %v1349_v9  ;;  %v432_v9 = vld [vmem:[%s2070_s8 + $0x48] sm:$0xff] }
 0x2e3   : > { %v1846_v41 = vadd.f32 %v771_v28, %v768_v39 }
 0x2e5   : > { %v783_v31 = vsel %vm782_vm8, %v1846_v41, 0.0 }
 0x2e6   : > { %v784_v43 = vadd.f32 %v783_v31, %v781_v42 }
 0x2e8   : > { %v785_v44 = vrot.slane %v784_v43, 4 }
 0x2ea   : > { %v786_v45 = vadd.f32 %v785_v44, %v784_v43  ;;  %v937_v43 = vld [vmem:[%s408_s25] sm:$0xf] }
 0x2ec   : > { %v787_v37 = vrot.slane %v786_v45, 2 }
 0x2ee   : > { %v788_v46 = vadd.f32 %v787_v37, %v786_v45 }
 0x2f0   : > { %v789_v47 = vrot.slane %v788_v46, 1 }
 0x2f2   : > { %v790_v48 = vadd.f32 %v789_v47, %v788_v46 }
 0x2f4   : > { %v792_v49 = vmul.f32 0.05, %v790_v48 }
 0x2f6   : > { %794 = vrot.lane.b32.xlu0 %v792_v49, %s1546_s26 }
 0x368   : > { %v795_v50 = vpop.permute.xlu0 %794 }
 0x369   : > { %v796_v51 = vsel %vm793_vm9, %v795_v50, %v792_v49 }
 0x36a   : > { %797 = vrot.lane.b32.xlu1 %v796_v51, %s1546_s26  ;;  %s1216_s26 = sld [smem:[#allocation2 + $0x3]] }
 0x370   : > { %v810_v11 = vstv %s1216_s26  ;;  %s1224_s26 = sld [smem:[#allocation2 + $0x7]] }
 0x3dc   : > { %v798_v53 = vpop.permute.xlu1 %797 }
 0x3dd   : > { %v799_v54 = vsel %vm793_vm9, %v798_v53, %v792_v49  ;;  %v424_v53 = vld [vmem:[%s2070_s8 + $0x8] sm:$0xff] }
 0x3de   : > { %806 = vrot.lane.b32.xlu1 %v799_v54, %s1542_s27  ;;  %801 = vrot.lane.b32.xlu0 %v799_v54, %s1547_s28  ;;  %s1217_s28 = sld [smem:[#allocation2 + $0x4]]  ;;  %v426_v54 = vld [vmem:[%s2070_s8 + $0x18] sm:$0xff] }
 0x3df   : > { %v1351_v55 = vpack.c.bf16 %v426_v54, %v424_v53 }
 0x3e1   : > { %1352 = vmatprep.subr.bf16.mxu1 %v1351_v55 }
 0x3e4   : > { %v812_v12 = vstv %s1217_s28  ;;  %s1225_s28 = sld [smem:[#allocation2 + $0x8]] }
 0x3e5   : > { %v813_v26 = vmul.f32 %v812_v12, %v792_v49 }
 0x450   : > { %v807_v14 = vpop.permute.xlu1 %806  ;;  %v802_v15 = vpop.permute.xlu0 %801 }
 0x451   : > { %v809_v18 = vsel %vm805_vm10, 0.0, %v807_v14  ;;  %v804_v23 = vsel %vm509_vm4, 0.0, %v802_v15  ;;  %v431_v14 = vld [vmem:[%s2070_s8 + $0x40] sm:$0xff]  ;;  %v433_v15 = vld [vmem:[%s2070_s8 + $0x50] sm:$0xff] }
 0x452   : > { %v811_v24 = vmul.f32 %v810_v11, %v804_v23  ;;  %v816_v27 = vmul.f32 %v815_v17, %v809_v18  ;;  %v434_v11 = vld [vmem:[%s2070_s8 + $0x58] sm:$0xff]  ;;  %v1361_v17 = vpack.c.bf16 %v433_v15, %v431_v14  ;;  %v436_v18 = vld [vmem:[%s2070_s8 + $0x68] sm:$0xff] }
 0x453   : > { %v1359_v12 = vpack.c.bf16 %v434_v11, %v432_v9  ;;  %v438_v23 = vld [vmem:[%s2070_s8 + $0x78] sm:$0xff] }
 0x454   : > { %v814_v29 = vadd.f32 %v813_v26, %v811_v24  ;;  %v1363_v24 = vpack.c.bf16 %v438_v23, %v436_v18  ;;  %v435_v26 = vld [vmem:[%s2070_s8 + $0x60] sm:$0xff] }
 0x456   : > { %v817_v52 = vadd.f32 %v816_v27, %v814_v29  ;;  %v437_v27 = vld [vmem:[%s2070_s8 + $0x70] sm:$0xff] }
 0x457   : > { %v1365_v29 = vpack.c.bf16 %v437_v27, %v435_v26 }
 0x458   : > { %v818_v30 = vsub.f32 0.0, %v817_v52  ;;  %v440_v52 = vld [vmem:[%s2070_s8 + $0x88] sm:$0xff] }
 0x45a   : > { %v819_v0 = vmul.f32 1.442695, %v818_v30  ;;  %v442_v30 = vld [vmem:[%s2070_s8 + $0x98] sm:$0xff] }
 0x45c   : > { %1448 = vpow2.f32 %v819_v0  ;;  %v1367_v0 = vpack.c.bf16 %v442_v30, %v440_v52 }
 0x466   : > { %v1449_v1 = vpop.eup %1448 }
 0x467   : > { %v821_v2 = vadd.f32 1.0, %v1449_v1  ;;  %v439_v1 = vld [vmem:[%s2070_s8 + $0x80] sm:$0xff] }
 0x469   : > { %1450 = vrcp.f32 %v821_v2  ;;  %v441_v2 = vld [vmem:[%s2070_s8 + $0x90] sm:$0xff] }
 0x473   : > { %v1451_v3 = vpop.eup %1450 }
 0x474   : > { %v824_v7 = vadd.f32 1.0, %v1451_v3  ;;  %v1369_v3 = vpack.c.bf16 %v441_v2, %v439_v1 }
 0x476   : > { %v828_v10 = vrot.slane %v824_v7, %v1774_v21  ;;  %v444_v7 = vld [vmem:[%s2070_s8 + $0xa8] sm:$0xff] }
 0x478   : > { %v829_v13 = vmul.f32 %v828_v10, %v1838_v34  ;;  %v830_v16 = vmul.f32 %v828_v10, %v1840_v25  ;;  %v831_v19 = vmul.f32 %v828_v10, %v1846_v41  ;;  %v446_v10 = vld [vmem:[%s2070_s8 + $0xb8] sm:$0xff] }
 0x47a   : > { %1325 = vmatmul.mubr.msk.f32.vlgmr.msra.gmra.mrb[0].mxu1 %vm778_vm7, %v829_v13  ;;  %v1371_v13 = vpack.c.bf16 %v446_v10, %v444_v7 }
 0x47b   : > { %1327 = vmatprep.mubr.msk.f32.mxu1 %vm1544_vm3, %v1545_v56  ;;  %1354 = vmatpush1.bf16.msra.mxu1 %v1353_v61 }
 0x47c   : > { %1356 = vmatprep.subr.bf16.mxu1 %v1355_v4  ;;  %v985_v4 = vsub.s32 1, %v1771_v20 }
 0x47e   : > { %1328 = vmatmul.mubr.msk.f32.gmra.mrb[2].mxu1 %vm778_vm7, %v830_v16  ;;  %v443_v16 = vld [vmem:[%s2070_s8 + $0xa0] sm:$0xff] }
 0x47f   : > { %1330 = vmatprep.mubr.msk.f32.mxu1 %vm1544_vm3, %v1545_v56  ;;  %1358 = vmatpush1.bf16.msra.mxu1 %v1357_v8 }
 0x480   : > { %1360 = vmatprep.subr.bf16.mxu1 %v1359_v12 }
 0x482   : > { %1331 = vmatmul.mubr.msk.f32.gmra.mrb[4].mxu1 %vm778_vm7, %v831_v19  ;;  %v445_v19 = vld [vmem:[%s2070_s8 + $0xb0] sm:$0xff] }
 0x483   : > { %1053 = vmatprep.mubr.f32.mxu1 %v1545_v56  ;;  %1362 = vmatpush1.bf16.msra.mxu1 %v1361_v17 }
 0x484   : > { %1364 = vmatprep.subr.bf16.mxu1 %v1363_v24 }
 0x487   : > { %1366 = vmatpush1.bf16.msra.mxu1 %v1365_v29 }
 0x488   : > { %1368 = vmatprep.subr.bf16.mxu1 %v1367_v0 }
 0x48b   : > { %1370 = vmatpush1.bf16.msra.mxu1 %v1369_v3 }
 0x48c   : > { %1372 = vmatprep.subr.bf16.mxu1 %v1371_v13 }
 0x54d   : > { %v913_v32 = vpop.f32.mrb[0].mxu1 }
 0x54e   : > { %v914_v33 = vadd.f32 %v1219_v22, %v913_v32  ;;  %v1326_v34 = vpop.f32.mrb[1].mxu1  ;;  %v448_v32 = vld [vmem:[%s2070_s8 + $0xc8] sm:$0xff] }
 0x550   : > { %v928_v35 = vrot.slane %v914_v33, 4 }
 0x551   : > { %v918_v25 = vpop.f32.mrb[2].mxu1 }
 0x552   : > { %v930_v36 = vmax.f32 %v914_v33, %v928_v35  ;;  %v919_v28 = vadd.f32 %v1219_v22, %v918_v25  ;;  %v1329_v38 = vpop.f32.mrb[3].mxu1  ;;  %v450_v33 = vld [vmem:[%s2070_s8 + $0xd8] sm:$0xff]  ;;  %v447_v35 = vld [vmem:[%s2070_s8 + $0xc0] sm:$0xff]  ;;  %v449_v25 = vld [vmem:[%s2070_s8 + $0xd0] sm:$0xff] }
 0x553   : > { %v1375_v34 = vpack.c.bf16 %v450_v33, %v448_v32  ;;  %v454_v38 = vld [vmem:[%s2070_s8 + $0xf8] sm:$0xff] }
 0x554   : > { %v931_v39 = vmax.f32 %v930_v36, %v919_v28  ;;  %v933_v40 = vrot.slane %v919_v28, 4  ;;  %v1377_v36 = vpack.c.bf16 %v449_v25, %v447_v35  ;;  %v452_v28 = vld [vmem:[%s2070_s8 + $0xe8] sm:$0xff] }
 0x555   : > { %v923_v56 = vpop.f32.mrb[4].mxu1 }
 0x556   : > { %v924_v41 = vadd.f32 %v1219_v22, %v923_v56  ;;  %v935_v42 = vmax.f32 %v931_v39, %v933_v40  ;;  %v1332_v31 = vpop.f32.mrb[5].mxu1  ;;  %v1373_v22 = vpack.c.bf16 %v445_v19, %v443_v16  ;;  %v451_v39 = vld [vmem:[%s2070_s8 + $0xe0] sm:$0xff]  ;;  %v1379_v40 = vpack.c.bf16 %v454_v38, %v452_v28  ;;  %v453_v56 = vld [vmem:[%s2070_s8 + $0xf0] sm:$0xff] }
 0x557   : > { %v960_v31 = vstv %s1224_s26 }
 0x558   : > { %v936_v44 = vmax.f32 %v935_v42, %v924_v41  ;;  %1374 = vmatpush1.bf16.msra.mxu1 %v1373_v22  ;;  %v1381_v41 = vpack.c.bf16 %v453_v56, %v451_v39  ;;  %v958_v42 = vstv %s1223_s11 }
 0x559   : > { %1376 = vmatprep.subr.bf16.mxu1 %v1375_v34 }
 0x55a   : > { %v1899_v45 = vadd.f32 %v937_v43, %v936_v44 }
 0x55c   : > { %v942_v37 = vsel %vm737_vm6, %v1899_v45, 0.0  ;;  %1378 = vmatpush1.bf16.msra.mxu1 %v1377_v36 }
 0x55d   : > { %v943_v46 = vrot.slane %v942_v37, 4  ;;  %1380 = vmatprep.subr.bf16.mxu1 %v1379_v40 }
 0x55f   : > { %v944_v47 = vadd.f32 %v943_v46, %v942_v37  ;;  %v963_v37 = vstv %s1225_s28  ;;  %s1081_s28 = scalar_lea.sflag [#allocation3], %s392_s12 }
 0x560   : > { %1382 = vmatpush1.bf16.msra.mxu1 %v1381_v41 }
 0x561   : > { %v945_v48 = vrot.slane %v944_v47, 2 }
 0x563   : > { %v946_v49 = vadd.f32 %v945_v48, %v944_v47 }
 0x565   : > { %v947_v50 = vrot.slane %v946_v49, 1 }
 0x567   : > { %v948_v51 = vadd.f32 %v947_v50, %v946_v49 }
 0x569   : > { %v1915_v60 = vmul.f32 0.25, %v948_v51 }
 0x56b   : > { %955 = vrot.lane.b32.xlu1 %v1915_v60, %s1542_s27  ;;  %951 = vrot.lane.b32.xlu0 %v1915_v60, %s1548_s21  ;;  %v961_v49 = vmul.f32 %v960_v31, %v1915_v60  ;;  %v455_v60 = vld [vmem:[%s2071_s9] sm:$0x3]  ;;  %s1232_s27 = sshll.u32 %s1626_s17, 6  ;;  %s1095_s21 = sshll.u32 %s394_s20, 4  ;;  %s2022_s21 = int_to_ptr.vmem [resolvable:$true] %s1095_s21 }
 0x56c   : > { %v982_v5 = vrot.slane %v455_v60, %v1774_v21  ;;  %v986_v6 = vrot.slane %v455_v60, %v985_v4  ;;  %s2020_s26 = scalar_lea.hbm %s2072_s10, %s1232_s27  ;;  %s1471_s29 = scalar_lea.vmem %s2022_s21, 64 }
 0x56d   : > { %p1472_p9 = scmp.ne.s32.totalorder %s2022_s21, %s1471_s29  ;;  %s1549_s17 = smov [#allocation5]  }
 0x56e   : > { %s1475_s30 = sshll.u32 %s1549_s17, 4  ;;  %s1476_s30 = int_to_ptr.vmem [resolvable:$false] %s1475_s30 }
 0x56f   : > { %p1473_p10 = pnand %p1472_p9, %p1643_p5  ;;  %s1477_s18 = scalar_lea.vmem %s1476_s30, 128 }
 0x570   : > { %p1478_p13 = scmp.lt.s32.totalorder %s2022_s21, %s1476_s30  ;;  %p1479_p0 = scmp.lt.s32.totalorder %s1477_s18, %s1471_s29 }
 0x571   : > { %p1474_p12 = pneg %p1473_p10 }
 0x572   : > { %p1480_p1 = por %p1479_p0, %p1478_p13 }
 0x574   : > { %p1481_p2 = pnand %p1480_p1, %p1474_p12 }
 0x5dd   : > { %v956_v43 = vpop.permute.xlu1 %955  ;;  %v952_v44 = vpop.permute.xlu0 %951 }
 0x5de   : > { %v957_v46 = vsel %vm954_vm11, 0.0, %v956_v43  ;;  %v953_v47 = vsel %vm509_vm4, 0.0, %v952_v44 }
 0x5df   : > { %v959_v48 = vmul.f32 %v958_v42, %v953_v47  ;;  %v964_v50 = vmul.f32 %v963_v37, %v957_v46 }
 0x5e1   : > { %v962_v51 = vadd.f32 %v961_v49, %v959_v48 }
 0x5e3   : > { %v965_v53 = vadd.f32 %v964_v50, %v962_v51 }
 0x5e5   : > { %v966_v54 = vsub.f32 0.0, %v965_v53 }
 0x5e7   : > { %v967_v55 = vmul.f32 1.442695, %v966_v54 }
 0x5e9   : > { %1452 = vpow2.f32 %v967_v55 }
 0x5f3   : > { %v1453_v57 = vpop.eup %1452 }
 0x5f4   : > { %v969_v59 = vadd.f32 1.0, %v1453_v57 }
 0x5f6   : > { %1454 = vrcp.f32 %v969_v59 }
 0x600   : > { %v1455_v61 = vpop.eup %1454 }
 0x601   : > { %v972_v62 = vadd.f32 1.0, %v1455_v61 }
 0x603   : > { %v976_v63 = vrot.slane %v972_v62, %v1774_v21 }
 0x605   : > { %v977_v58 = vmul.f32 %v976_v63, %v1899_v45 }
 0x607   : > { %1054 = vmatmul.mubr.f32.vlgmr.msra.gmra.mrb[6].mxu1 %v977_v58 }
 0x6da   : > { %v1055_v8 = vpop.f32.mrb[6].mxu1 }
 0x6db   : > { %v1056_v9 = vadd.f32 %v1055_v8, %v982_v5  ;;  %v1057_v11 = vpop.f32.mrb[7].mxu1 }
 0x6dc   : > { %v1058_v12 = vadd.f32 %v1057_v11, %v986_v6 }
 0x6dd   : > { %v1062_v14 = vrot.slane %v1056_v9, 2 }
 0x6de   : > { %v1063_v15 = vrot.slane %v1058_v12, 2 }
 0x6df   : > { %v1066_v45 = vmax.f32 %v1056_v9, %v1062_v14 }
 0x6e0   : > { %v1067_v17 = vmax.f32 %v1058_v12, %v1063_v15 }
 0x6e2   : > { %v1070_v18 = vcombine.low %v1066_v45, %v1067_v17 }
 0x6e4   : > { %1226 = vst.sshfl [vmem:[%s394_s20] sm:$0x33 pattern:$0x76325410] %v1070_v18 }
 0x6e5   : > { %1484 = shalt.err (!%p1481_p2)
}
 0x6e6   : > { %s1485_s12 = scalar_lea.hbm %s2020_s26, 64  ;;  %s1489_s25 = scalar_lea.hbm %s2072_s10, 128 }
 0x6e7   : > { %p1486_p3 = scmp.ne.s32.totalorder %s2020_s26, %s1485_s12  ;;  %p1490_p8 = scmp.lt.u32.totalorder %s2020_s26, %s2072_s10 }
 0x6e8   : > { %p1491_p11 = scmp.lt.u32.totalorder %s1489_s25, %s1485_s12  ;;  %p1493_p10 = scmp.lt.u32.totalorder %s1485_s12, %s2020_s26 }
 0x6e9   : > { %p1487_p4 = pnand %p1486_p3, %p1643_p5 }
 0x6ea   : > { %p1492_p9 = por %p1491_p11, %p1490_p8 }
 0x6eb   : > { %p1488_p7 = pneg %p1487_p4 }
 0x6ec   : > { %p1494_p12 = por %p1493_p10, %p1492_p9 }
 0x6ee   : > { %p1495_p13 = pnand %p1494_p12, %p1488_p7 }
 0x6f0   : > { %1498 = shalt.err (!%p1495_p13)
}
 0x6f1   : > { %1389 = dma.vmem_to_hbm [thread:$0]  (%p1643_p5), %s2022_s21, 64, %s2020_s26, %s1081_s28  }
 0x6f2 PF: > { %p1401_p0 = scmp.ge.s32.totalorder %s1537_s16, 2  ;;  %s1107_s29 = sand.u32 1, %s1525_s13  }
 0x6f3   : > { %s1108_s30 = scalar_lea.sflag [#allocation3], %s1107_s29 }
 0x6f4   : > { %p1396_p1 = pnand %p1401_p0, %p1647_p6 }
 0x6f6   : > { %1520 = dma.done.wait (!%p1396_p1), %s1108_s30, 64  }
 0x6f7   : > { %1522 = vsyncadd (!%p1396_p1), %s1108_s30, 4294967232  ;;  %p21_p2 = scmp.ge.s32.totalorder %s1630_s19, 4   ;;  %s2076_s13 = smov %s1529_s14 }
 0x6f8   : > { %s2077_s14 = smov %s1533_s15  ;;  %s2078_s15 = smov %s1641_s22 }
 0x6f9   : > { %s2079_s16 = smov %s1630_s19  ;;  %23 = sbr.rel (!%p21_p2) target bundleno = 4 (0x4), region = 106 }
 0x700   :  { %1113 = vsyncpa [#allocation3], 1 }
 0x701   :  { %1115 = vsyncpa [#allocation3 + $0x1], 1 }
 0x702   :  { %1116 = vsyncpa [#allocation4], 1 }
 0x703   :  { %1118 = vsyncpa [#allocation4 + $0x1], 1 }

</bundles_post_ra>
